<compile_context>
chip_gen: v5e
topology: v5e:2x2
jax: 0.10.0
libtpu: 0.0.40
codegen_flags: <defaults>
</compile_context>

<pallas_src>
import math

import jax
import jax.numpy as jnp
from jax.experimental import pallas as pl
from jax.experimental.pallas import tpu as pltpu

LN_EPS = 1e-5
INV_SQRT2 = 1.0 / math.sqrt(2.0)

LANE = 128
FF_CHUNK_MAX = 1024     # max d_ff slice held live as f32 in the resident kernel
FF_STREAM_TILE = 512    # d_ff block when streaming weights from HBM (fallback)
_MIB = 1024 * 1024


def _cdiv(a, b):
    return -(-a // b)


def _round_up(a, b):
    return _cdiv(a, b) * b


def _gelu(h):
    # exact (erf) GELU, matching torch.nn.functional.gelu's default
    return 0.5 * h * (1.0 + jax.lax.erf(h * INV_SQRT2))


def _layer_norm(z, gamma, beta, d_model, d_model_pad):
    """LayerNorm over the last axis; masked to the real d_model lanes when the
    feature dim was padded to a lane-dense multiple of 128."""
    if d_model_pad == d_model:
        mean = jnp.mean(z, axis=-1, keepdims=True)
        cent = z - mean
        var = jnp.mean(cent * cent, axis=-1, keepdims=True)
    else:
        lane = jax.lax.broadcasted_iota(jnp.int32, z.shape, 1)
        mask = lane < d_model
        inv_n = 1.0 / d_model
        mean = jnp.sum(jnp.where(mask, z, 0.0), axis=-1, keepdims=True) * inv_n
        cent = jnp.where(mask, z - mean, 0.0)
        var = jnp.sum(cent * cent, axis=-1, keepdims=True) * inv_n
    zn = cent * jax.lax.rsqrt(var + LN_EPS)
    return zn * gamma + beta


# ----------------------------------------------------------------------------
# Kernel 1: weights fully resident in VMEM, d_ff chunked inside the kernel.
# ----------------------------------------------------------------------------
def _make_resident_kernel(d_model, d_model_pad, ff_chunk, n_chunks):
    def kernel(x_ref, w1_ref, b1_ref, w2_ref, b2_ref, g_ref, bt_ref,
               o_ref, acc_ref):
        x = x_ref[...]                              # [tm, d_model_pad]
        xm = x.astype(w1_ref.dtype)                 # matmul operand dtype

        def ff_block(off):
            # linear1 chunk -> GELU -> linear2 partial product (f32 accumulate)
            h = jnp.dot(xm, w1_ref[:, pl.ds(off, ff_chunk)],
                        preferred_element_type=jnp.float32)
            h = h + b1_ref[:, pl.ds(off, ff_chunk)].astype(jnp.float32)
            h = _gelu(h)
            return jnp.dot(h.astype(w2_ref.dtype),
                           w2_ref[pl.ds(off, ff_chunk), :],
                           preferred_element_type=jnp.float32)

        if n_chunks <= 4:
            # static unroll; acc scratch unused
            y = ff_block(0)
            for c in range(1, n_chunks):
                y = y + ff_block(c * ff_chunk)
        else:
            acc_ref[...] = ff_block(0)

            @pl.loop(1, n_chunks)
            def _(c):
                off = pl.multiple_of(c * ff_chunk, ff_chunk)
                acc_ref[...] += ff_block(off)

            y = acc_ref[...]

        # dropout is identity at inference time
        y = y + b2_ref[...].astype(jnp.float32)
        z = x.astype(jnp.float32) + y               # residual
        out = _layer_norm(z, g_ref[...].astype(jnp.float32),
                          bt_ref[...].astype(jnp.float32),
                          d_model, d_model_pad)
        o_ref[...] = out.astype(o_ref.dtype)

    return kernel


# ----------------------------------------------------------------------------
# Kernel 2 (fallback): weights streamed along d_ff (second "arbitrary" grid
# axis) with a pl.when-init/finalize f32 accumulator.  Needed on v7x (64 MiB
# VMEM/TC) when W1+W2 cannot be resident even single-buffered.
# ----------------------------------------------------------------------------
def _make_streamed_kernel(d_model, d_model_pad):
    def kernel(x_ref, w1_ref, b1_ref, w2_ref, b2_ref, g_ref, bt_ref,
               o_ref, acc_ref):
        k = pl.program_id(1)

        @pl.when(k == 0)
        def _():
            acc_ref[...] = jnp.zeros_like(acc_ref)

        x = x_ref[...]
        h = jnp.dot(x.astype(w1_ref.dtype), w1_ref[...],
                    preferred_element_type=jnp.float32)
        h = _gelu(h + b1_ref[...].astype(jnp.float32))
        acc_ref[...] += jnp.dot(h.astype(w2_ref.dtype), w2_ref[...],
                                preferred_element_type=jnp.float32)

        @pl.when(k == pl.num_programs(1) - 1)
        def _():
            y = acc_ref[...] + b2_ref[...].astype(jnp.float32)
            z = x.astype(jnp.float32) + y
            out = _layer_norm(z, g_ref[...].astype(jnp.float32),
                              bt_ref[...].astype(jnp.float32),
                              d_model, d_model_pad)
            o_ref[...] = out.astype(o_ref.dtype)

    return kernel


def _pad2(a, rows, cols):
    if rows or cols:
        return jnp.pad(a, ((0, rows), (0, cols)))
    return a


def feed_forward(x, w1, b1, w2, b2, gamma, beta, *,
                 tile_m=None, cast_matmuls_to_bf16=False, force_stream=False):
    """x: [batch, seq, d_model] -> [batch, seq, d_model].

    Weights are stored pre-transposed as [in_features, out_features]."""
    batch, seq, d_model = x.shape
    d_ff = w1.shape[1]
    n = batch * seq

    b1 = jnp.reshape(b1, (1, -1))
    b2 = jnp.reshape(b2, (1, -1))
    gamma = jnp.reshape(gamma, (1, -1))
    beta = jnp.reshape(beta, (1, -1))

    # ---------------- generation-aware VMEM budget / tile sizes --------------
    try:
        vmem_cap = int(pltpu.get_tpu_info().vmem_capacity_bytes)
    except Exception:  # conservative fallback (v7x-sized)
        vmem_cap = 64 * _MIB
    # ~52 MiB on v7x (64 MiB/TC), ~105 MiB on v5e/v6e (128 MiB); headroom for
    # Mosaic internal scratch.
    budget = int(vmem_cap * 0.82)

    if tile_m is None:
        # bigger row tiles where VMEM allows (v5e/v6e); tighter on v7x
        tile_m = 512 if vmem_cap >= 100 * _MIB else 256

    # ---------------- lane-dense padding of the feature dims -----------------
    d_model_pad = _round_up(d_model, LANE)
    d_ff_128 = _round_up(d_ff, LANE)

    # resident path: in-kernel d_ff chunking bounds the live f32 intermediate
    n_chunks = max(1, _cdiv(d_ff_128, FF_CHUNK_MAX))
    ff_chunk = _round_up(_cdiv(d_ff_128, n_chunks), LANE)
    d_ff_res = n_chunks * ff_chunk

    # streamed path: d_ff block streamed per grid step
    n_kff = max(1, _cdiv(d_ff_128, FF_STREAM_TILE))
    tff = _round_up(_cdiv(d_ff_128, n_kff), LANE)
    d_ff_str = n_kff * tff

    # ---------------- row tile & path selection ------------------------------
    x_isz = x.dtype.itemsize
    w_dtype = jnp.bfloat16 if cast_matmuls_to_bf16 else w1.dtype
    w_isz = jnp.dtype(w_dtype).itemsize
    sublane = 16 if x.dtype == jnp.bfloat16 else 8

    n_round = _round_up(n, sublane)
    tm = min(tile_m, n_round)

    def resident_bytes(t):
        w = (d_model_pad * d_ff_res + d_ff_res * d_model_pad) * w_isz \
            + d_ff_res * w_isz + 3 * d_model_pad * 4          # single-buffered
        io = 2 * 2 * t * d_model_pad * x_isz                  # dbl-buf x + out
        acc = 4 * t * d_model_pad                             # f32 acc scratch
        work = 2 * 4 * t * ff_chunk + 2 * 4 * t * d_model_pad
        return w + io + acc + work

    def streamed_bytes(t):
        w = 2 * (d_model_pad * tff + tff * d_model_pad + tff) * w_isz \
            + 3 * d_model_pad * 4
        io = 2 * 2 * t * d_model_pad * x_isz
        acc = 4 * t * d_model_pad
        work = 2 * 4 * t * tff + 2 * 4 * t * d_model_pad
        return w + io + acc + work

    use_stream = bool(force_stream)
    if not use_stream:
        while tm > 2 * sublane and resident_bytes(tm) > budget:
            tm = max(sublane, _round_up(tm // 2, sublane))
        if resident_bytes(tm) > budget:
            use_stream = True                 # weights cannot stay resident
            tm = min(tile_m, n_round)
    if use_stream:
        while tm > 2 * sublane and streamed_bytes(tm) > budget:
            tm = max(sublane, _round_up(tm // 2, sublane))

    d_ff_pad = d_ff_str if use_stream else d_ff_res
    n_pad = _cdiv(n, tm) * tm

    # ---------------- pad / cast operands ------------------------------------
    # Zero padding is exact: padded x lanes / w1 rows contribute 0 to linear1,
    # padded d_ff columns give GELU(0)=0 against zero w2 rows, padded d_model
    # output lanes are masked out of the LayerNorm stats and zeroed by padded
    # gamma/beta, then sliced off.  Padded rows are independent (per-row LN).
    x2d = _pad2(x.reshape(n, d_model), n_pad - n, d_model_pad - d_model)
    w1_p = _pad2(w1, d_model_pad - d_model, d_ff_pad - d_ff)
    b1_p = _pad2(b1, 0, d_ff_pad - d_ff)
    w2_p = _pad2(w2, d_ff_pad - d_ff, d_model_pad - d_model)
    b2_p = _pad2(b2, 0, d_model_pad - d_model)
    g_p = _pad2(gamma, 0, d_model_pad - d_model)
    bt_p = _pad2(beta, 0, d_model_pad - d_model)
    if cast_matmuls_to_bf16:
        w1_p = w1_p.astype(jnp.bfloat16)
        w2_p = w2_p.astype(jnp.bfloat16)

    res1 = pl.Buffered(1)   # constant-index operands: single-buffered in VMEM

    if not use_stream:
        kernel = _make_resident_kernel(d_model, d_model_pad, ff_chunk, n_chunks)
        grid = (n_pad // tm,)
        # TODO(synk): if profiling shows exposed x-tile DMA at real shapes
        # (small d_ff, mem-bound), bump x/out to pipeline_mode=pl.Buffered(3).
        in_specs = [
            pl.BlockSpec((tm, d_model_pad), lambda i: (i, 0)),            # x
            pl.BlockSpec((d_model_pad, d_ff_pad), lambda i: (0, 0),
                         pipeline_mode=res1),                             # W1
            pl.BlockSpec((1, d_ff_pad), lambda i: (0, 0),
                         pipeline_mode=res1),                             # b1
            pl.BlockSpec((d_ff_pad, d_model_pad), lambda i: (0, 0),
                         pipeline_mode=res1),                             # W2
            pl.BlockSpec((1, d_model_pad), lambda i: (0, 0),
                         pipeline_mode=res1),                             # b2
            pl.BlockSpec((1, d_model_pad), lambda i: (0, 0),
                         pipeline_mode=res1),                             # gamma
            pl.BlockSpec((1, d_model_pad), lambda i: (0, 0),
                         pipeline_mode=res1),                             # beta
        ]
        out_specs = pl.BlockSpec((tm, d_model_pad), lambda i: (i, 0))
        dims = ("parallel",)
    else:
        kernel = _make_streamed_kernel(d_model, d_model_pad)
        grid = (n_pad // tm, d_ff_pad // tff)
        in_specs = [
            pl.BlockSpec((tm, d_model_pad), lambda i, k: (i, 0)),         # x
            pl.BlockSpec((d_model_pad, tff), lambda i, k: (0, k)),        # W1 blk
            pl.BlockSpec((1, tff), lambda i, k: (0, k)),                  # b1 blk
            pl.BlockSpec((tff, d_model_pad), lambda i, k: (k, 0)),        # W2 blk
            pl.BlockSpec((1, d_model_pad), lambda i, k: (0, 0),
                         pipeline_mode=res1),                             # b2
            pl.BlockSpec((1, d_model_pad), lambda i, k: (0, 0),
                         pipeline_mode=res1),                             # gamma
            pl.BlockSpec((1, d_model_pad), lambda i, k: (0, 0),
                         pipeline_mode=res1),                             # beta
        ]
        out_specs = pl.BlockSpec((tm, d_model_pad), lambda i, k: (i, 0))
        dims = ("parallel", "arbitrary")

    out2d = pl.pallas_call(
        kernel,
        out_shape=jax.ShapeDtypeStruct((n_pad, d_model_pad), x.dtype),
        grid=grid,
        in_specs=in_specs,
        out_specs=out_specs,
        scratch_shapes=[pltpu.VMEM((tm, d_model_pad), jnp.float32)],
        compiler_params=pltpu.CompilerParams(
            dimension_semantics=dims,
            vmem_limit_bytes=int(budget)),
    )(x2d, w1_p, b1_p, w2_p, b2_p, g_p, bt_p)

    return out2d[:n, :d_model].reshape(batch, seq, d_model)


# ----------------------------------------------------------------------------
# Parameter init matching the PyTorch module, and a pure-JAX reference.
# ----------------------------------------------------------------------------
def _xavier_uniform(key, fan_in, fan_out, dtype=jnp.float32):
    limit = math.sqrt(6.0 / (fan_in + fan_out))
    return jax.random.uniform(key, (fan_in, fan_out), dtype,
                              minval=-limit, maxval=limit)


def init_params(key, d_model, d_ff, dtype=jnp.float32):
    k1, k2, k3, k4 = jax.random.split(key, 4)
    w1 = _xavier_uniform(k1, d_model, d_ff, dtype)          # [in, out]
    w2 = _xavier_uniform(k2, d_ff, d_model, dtype)
    b1 = jax.random.uniform(k3, (1, d_ff), dtype,
                            minval=-1.0 / math.sqrt(d_model),
                            maxval=1.0 / math.sqrt(d_model))
    b2 = jax.random.uniform(k4, (1, d_model), dtype,
                            minval=-1.0 / math.sqrt(d_ff),
                            maxval=1.0 / math.sqrt(d_ff))
    gamma = jnp.ones((1, d_model), dtype)
    beta = jnp.zeros((1, d_model), dtype)
    return w1, b1, w2, b2, gamma, beta


def _reference(x, w1, b1, w2, b2, gamma, beta):
    h = x @ w1 + b1
    h = 0.5 * h * (1.0 + jax.lax.erf(h * INV_SQRT2))
    y = h @ w2 + b2
    z = x + y
    mean = jnp.mean(z, axis=-1, keepdims=True)
    var = jnp.mean((z - mean) ** 2, axis=-1, keepdims=True)
    return (z - mean) / jnp.sqrt(var + LN_EPS) * gamma + beta


if __name__ == "__main__":
    # Full-precision f32 matmuls for the reference comparison (both the
    # reference and the in-kernel dots), so tolerances are meaningful.
    jax.config.update("jax_default_matmul_precision", "highest")

    def _check(batch, seq, d_model, d_ff, key, **kw):
        kx, kp = jax.random.split(key)
        x = jax.random.normal(kx, (batch, seq, d_model), jnp.float32)
        params = init_params(kp, d_model, d_ff)
        out = jax.block_until_ready(feed_forward(x, *params, **kw))
        ref = _reference(x, *params)
        assert out.shape == (batch, seq, d_model)
        assert jnp.allclose(out, ref, atol=2e-4, rtol=2e-4), \
            f"mismatch at {(batch, seq, d_model, d_ff, kw)}"

    key = jax.random.PRNGKey(0)
    k1, k2, k3, k4 = jax.random.split(key, 4)

    # small shape (lane-dense padding + masked LayerNorm path)
    _check(2, 8, 32, 64, k1)
    # multi-row-tile resident-weight path
    _check(3, 200, 128, 256, k2)
    # d_ff-streamed weight fallback (v7x non-resident path), forced here
    _check(2, 64, 128, 1536, k3, force_stream=True)
    # in-kernel d_ff chunk loop (pl.loop) on the resident path
    _check(2, 64, 128, 4608, k4)

    print("KERNEL_OK")
</pallas_src>

<mosaic_0001>
module attributes {stable_mosaic.version = 11 : i64} {
  func.func @kernel(%arg0: i32, %arg1: memref<16x128xf32, #tpu.memory_space<vmem>>, %arg2: memref<128x128xf32, #tpu.memory_space<vmem>>, %arg3: memref<1x128xf32, #tpu.memory_space<vmem>>, %arg4: memref<128x128xf32, #tpu.memory_space<vmem>>, %arg5: memref<1x128xf32, #tpu.memory_space<vmem>>, %arg6: memref<1x128xf32, #tpu.memory_space<vmem>>, %arg7: memref<1x128xf32, #tpu.memory_space<vmem>>, %arg8: memref<16x128xf32, #tpu.memory_space<vmem>>, %arg9: memref<16x128xf32, #tpu.memory_space<vmem>>) attributes {dimension_semantics = [#tpu.dimension_semantics<parallel>], iteration_bounds = array<i64: 1>, scalar_prefetch = 0 : i64, scratch_operands = 1 : i64, tpu.core_type = #tpu.core_type<tc>, window_params = [{transform_indices = @transform_0, window_bounds = array<i64: 16, 128>}, {pipeline_mode = #tpu.pipeline_mode<synchronous>, transform_indices = @transform_1, window_bounds = array<i64: 128, 128>}, {pipeline_mode = #tpu.pipeline_mode<synchronous>, transform_indices = @transform_2, window_bounds = array<i64: 1, 128>}, {pipeline_mode = #tpu.pipeline_mode<synchronous>, transform_indices = @transform_3, window_bounds = array<i64: 128, 128>}, {pipeline_mode = #tpu.pipeline_mode<synchronous>, transform_indices = @transform_4, window_bounds = array<i64: 1, 128>}, {pipeline_mode = #tpu.pipeline_mode<synchronous>, transform_indices = @transform_5, window_bounds = array<i64: 1, 128>}, {pipeline_mode = #tpu.pipeline_mode<synchronous>, transform_indices = @transform_6, window_bounds = array<i64: 1, 128>}, {transform_indices = @transform_7, window_bounds = array<i64: 16, 128>}]} {
    %c0 = arith.constant 0 : index
    %c0_0 = arith.constant 0 : index
    %0 = vector.load %arg1[%c0, %c0_0] : memref<16x128xf32, #tpu.memory_space<vmem>>, vector<16x128xf32>
    %c0_1 = arith.constant 0 : index
    %c0_2 = arith.constant 0 : index
    %1 = vector.load %arg2[%c0_1, %c0_2] : memref<128x128xf32, #tpu.memory_space<vmem>>, vector<128x128xf32>
    %cst = arith.constant dense<0.000000e+00> : vector<16x128xf32>
    %2 = tpu.matmul %0, %1, %cst {dimension_numbers = #tpu.dot_dimension_numbers<[1], [0], [0], [1], [0, 0, 1, 1], [], []>, precision = #tpu.contract_precision<fp32>} : vector<16x128xf32>, vector<128x128xf32>, vector<16x128xf32> -> vector<16x128xf32>
    %c0_3 = arith.constant 0 : index
    %c0_4 = arith.constant 0 : index
    %3 = vector.load %arg3[%c0_3, %c0_4] : memref<1x128xf32, #tpu.memory_space<vmem>>, vector<1x128xf32>
    %4 = vector.broadcast %3 : vector<1x128xf32> to vector<16x128xf32>
    %5 = arith.addf %2, %4 : vector<16x128xf32>
    %cst_5 = arith.constant 5.000000e-01 : f32
    %6 = vector.broadcast %cst_5 : f32 to vector<16x128xf32>
    %7 = arith.mulf %6, %5 : vector<16x128xf32>
    %cst_6 = arith.constant 0.707106769 : f32
    %8 = vector.broadcast %cst_6 : f32 to vector<16x128xf32>
    %9 = arith.mulf %5, %8 : vector<16x128xf32>
    %10 = math.erf %9 : vector<16x128xf32>
    %cst_7 = arith.constant 1.000000e+00 : f32
    %11 = vector.broadcast %cst_7 : f32 to vector<16x128xf32>
    %12 = arith.addf %11, %10 : vector<16x128xf32>
    %13 = arith.mulf %7, %12 : vector<16x128xf32>
    %c0_8 = arith.constant 0 : index
    %c0_9 = arith.constant 0 : index
    %14 = vector.load %arg4[%c0_8, %c0_9] : memref<128x128xf32, #tpu.memory_space<vmem>>, vector<128x128xf32>
    %cst_10 = arith.constant dense<0.000000e+00> : vector<16x128xf32>
    %15 = tpu.matmul %13, %14, %cst_10 {dimension_numbers = #tpu.dot_dimension_numbers<[1], [0], [0], [1], [0, 0, 1, 1], [], []>, precision = #tpu.contract_precision<fp32>} : vector<16x128xf32>, vector<128x128xf32>, vector<16x128xf32> -> vector<16x128xf32>
    %c0_11 = arith.constant 0 : index
    %c0_12 = arith.constant 0 : index
    %16 = vector.load %arg5[%c0_11, %c0_12] : memref<1x128xf32, #tpu.memory_space<vmem>>, vector<1x128xf32>
    %17 = vector.broadcast %16 : vector<1x128xf32> to vector<16x128xf32>
    %18 = arith.addf %15, %17 : vector<16x128xf32>
    %19 = arith.addf %0, %18 : vector<16x128xf32>
    %c0_13 = arith.constant 0 : index
    %c0_14 = arith.constant 0 : index
    %20 = vector.load %arg6[%c0_13, %c0_14] : memref<1x128xf32, #tpu.memory_space<vmem>>, vector<1x128xf32>
    %c0_15 = arith.constant 0 : index
    %c0_16 = arith.constant 0 : index
    %21 = vector.load %arg7[%c0_15, %c0_16] : memref<1x128xf32, #tpu.memory_space<vmem>>, vector<1x128xf32>
    %22 = tpu.iota {dimensions = array<i32: 1>} : vector<16x128xi32>
    %c32_i32 = arith.constant 32 : i32
    %23 = vector.broadcast %c32_i32 : i32 to vector<16x128xi32>
    %24 = arith.cmpi slt, %22, %23 : vector<16x128xi32>
    %cst_17 = arith.constant 0.000000e+00 : f32
    %25 = vector.broadcast %cst_17 : f32 to vector<16x128xf32>
    %26 = arith.select %24, %19, %25 : vector<16x128xi1>, vector<16x128xf32>
    %cst_18 = arith.constant dense<0.000000e+00> : vector<16xf32>
    %27 = vector.multi_reduction <add>, %26, %cst_18 [1] : vector<16x128xf32> to vector<16xf32>
    %28 = vector.shape_cast %27 : vector<16xf32> to vector<16x1xf32>
    %cst_19 = arith.constant 3.125000e-02 : f32
    %29 = vector.broadcast %cst_19 : f32 to vector<16x1xf32>
    %30 = arith.mulf %28, %29 : vector<16x1xf32>
    %31 = vector.broadcast %30 : vector<16x1xf32> to vector<16x128xf32>
    %32 = arith.subf %19, %31 : vector<16x128xf32>
    %cst_20 = arith.constant 0.000000e+00 : f32
    %33 = vector.broadcast %cst_20 : f32 to vector<16x128xf32>
    %34 = arith.select %24, %32, %33 : vector<16x128xi1>, vector<16x128xf32>
    %35 = arith.mulf %34, %34 : vector<16x128xf32>
    %cst_21 = arith.constant dense<0.000000e+00> : vector<16xf32>
    %36 = vector.multi_reduction <add>, %35, %cst_21 [1] : vector<16x128xf32> to vector<16xf32>
    %37 = vector.shape_cast %36 : vector<16xf32> to vector<16x1xf32>
    %cst_22 = arith.constant 3.125000e-02 : f32
    %38 = vector.broadcast %cst_22 : f32 to vector<16x1xf32>
    %39 = arith.mulf %37, %38 : vector<16x1xf32>
    %cst_23 = arith.constant 9.99999974E-6 : f32
    %40 = vector.broadcast %cst_23 : f32 to vector<16x1xf32>
    %41 = arith.addf %39, %40 : vector<16x1xf32>
    %42 = math.rsqrt %41 : vector<16x1xf32>
    %43 = vector.broadcast %42 : vector<16x1xf32> to vector<16x128xf32>
    %44 = arith.mulf %34, %43 : vector<16x128xf32>
    %45 = vector.broadcast %20 : vector<1x128xf32> to vector<16x128xf32>
    %46 = arith.mulf %44, %45 : vector<16x128xf32>
    %47 = vector.broadcast %21 : vector<1x128xf32> to vector<16x128xf32>
    %48 = arith.addf %46, %47 : vector<16x128xf32>
    %c0_24 = arith.constant 0 : index
    %c0_25 = arith.constant 0 : index
    %49 = vector.load %arg8[%c0_24, %c0_25] : memref<16x128xf32, #tpu.memory_space<vmem>>, vector<16x128xf32>
    tpu.vector_store %arg8[%c0_24, %c0_25], %48 {strides = array<i32>} : memref<16x128xf32, #tpu.memory_space<vmem>>, vector<16x128xf32>,
    return
  }
  func.func @transform_0(%arg0: i32) -> (i32, i32) {
    %c0_i32 = arith.constant 0 : i32
    %c0_i32_0 = arith.constant 0 : i32
    return %arg0, %c0_i32 : i32, i32
  }
  func.func @transform_1(%arg0: i32) -> (i32, i32) {
    %c0_i32 = arith.constant 0 : i32
    %c0_i32_0 = arith.constant 0 : i32
    %c0_i32_1 = arith.constant 0 : i32
    return %c0_i32, %c0_i32_0 : i32, i32
  }
  func.func @transform_2(%arg0: i32) -> (i32, i32) {
    %c0_i32 = arith.constant 0 : i32
    %c0_i32_0 = arith.constant 0 : i32
    %c0_i32_1 = arith.constant 0 : i32
    return %c0_i32, %c0_i32_0 : i32, i32
  }
  func.func @transform_3(%arg0: i32) -> (i32, i32) {
    %c0_i32 = arith.constant 0 : i32
    %c0_i32_0 = arith.constant 0 : i32
    %c0_i32_1 = arith.constant 0 : i32
    return %c0_i32, %c0_i32_0 : i32, i32
  }
  func.func @transform_4(%arg0: i32) -> (i32, i32) {
    %c0_i32 = arith.constant 0 : i32
    %c0_i32_0 = arith.constant 0 : i32
    %c0_i32_1 = arith.constant 0 : i32
    return %c0_i32, %c0_i32_0 : i32, i32
  }
  func.func @transform_5(%arg0: i32) -> (i32, i32) {
    %c0_i32 = arith.constant 0 : i32
    %c0_i32_0 = arith.constant 0 : i32
    %c0_i32_1 = arith.constant 0 : i32
    return %c0_i32, %c0_i32_0 : i32, i32
  }
  func.func @transform_6(%arg0: i32) -> (i32, i32) {
    %c0_i32 = arith.constant 0 : i32
    %c0_i32_0 = arith.constant 0 : i32
    %c0_i32_1 = arith.constant 0 : i32
    return %c0_i32, %c0_i32_0 : i32, i32
  }
  func.func @transform_7(%arg0: i32) -> (i32, i32) {
    %c0_i32 = arith.constant 0 : i32
    %c0_i32_0 = arith.constant 0 : i32
    return %arg0, %c0_i32 : i32, i32
  }
}

</mosaic_0001>

<bundles_post_ra>
// kernel: tpu_custom_call.1
= control target key start
LH: loop header
LB: loop body
LE: loop exit
PB: predicated region body
PF: predicated region fallthrough
CT: control target
= control target key end

     0   :  { %12 = vsyncpa [#allocation4], 0  ;;  %s1788_s0 = inlined_call_operand.hbm [shape: f32[16,128], index: 0, kind: input, shape index: {}]   ;;  %s1789_s1 = inlined_call_operand.hbm [shape: f32[128,128], index: 1, kind: input, shape index: {}]   ;;  %s1790_s2 = inlined_call_operand.vmem [shape: f32[1,128], index: 2, kind: input, shape index: {}]   ;;  %s1791_s3 = inlined_call_operand.hbm [shape: f32[128,128], index: 3, kind: input, shape index: {}]   ;;  %s1792_s4 = inlined_call_operand.vmem [shape: f32[1,128], index: 4, kind: input, shape index: {}]   ;;  %s1793_s5 = inlined_call_operand.vmem [shape: f32[1,128], index: 5, kind: input, shape index: {}]   ;;  %s1794_s6 = inlined_call_operand.vmem [shape: f32[1,128], index: 6, kind: input, shape index: {}]   ;;  %s1795_s7 = inlined_call_operand.hbm [shape: f32[16,128], index: 7, kind: output, shape index: {}]  }
   0x1   :  { %13 = vsyncpa [#allocation7], 0 }
   0x2   :  { %14 = vsyncpa [#allocation5], 0  ;;  %s32_s26 = sshll.u32 %s1789_s1, 4  ;;  %s1153_s27 = smov [#allocation6]   ;;  %s33_s26 = int_to_ptr.hbm [resolvable:$true] %s32_s26 }
   0x3   :  { %s34_s28 = sshll.u32 %s1153_s27, 4  ;;  %s19_s8 = sshll.u32 %s1788_s0, 4  ;;  %s35_s28 = int_to_ptr.vmem [resolvable:$true] %s34_s28  ;;  %s20_s8 = int_to_ptr.hbm [resolvable:$true] %s19_s8 }
   0x4   :  { %s1154_s9 = smov 128   ;;  %s1155_s10 = smov 8  }
   0x5   :  { %40 = dma.hbm_to_vmem [thread:$0]  %s33_s26, 2048, %s35_s28, [#allocation7], %s1154_s9, %s1154_s9, %s1155_s10  }
   0x6   :  { %s1156_s11 = smov [#allocation3]   ;;  %s47_s1 = sshll.u32 %s1791_s3, 4  ;;  %s48_s1 = int_to_ptr.hbm [resolvable:$true] %s47_s1 }
   0x7   :  { %s21_s12 = sshll.u32 %s1156_s11, 4  ;;  %s1157_s0 = smov [#allocation8]   ;;  %s22_s12 = int_to_ptr.vmem [resolvable:$true] %s21_s12 }
   0x8   :  { %27 = dma.hbm_to_vmem [thread:$0]  %s20_s8, 256, %s22_s12, [#allocation4], %s1154_s9, %s1154_s9, %s1155_s10  }
   0x9   :  { %s49_s15 = sshll.u32 %s1157_s0, 4  ;;  %s50_s15 = int_to_ptr.vmem [resolvable:$true] %s49_s15 }
   0xa   :  { %55 = dma.hbm_to_vmem [thread:$0]  %s48_s1, 2048, %s50_s15, [#allocation7], %s1154_s9, %s1154_s9, %s1155_s10  }
   0xb   :  { %1147 = dma.done.wait [#allocation4], 256  }
   0xc   :  { %1148 = vsyncadd [#allocation4], 4294967040 }
   0xd   :  { %1149 = dma.done.wait [#allocation7], 4096  }
   0xe   :  { %1150 = vsyncadd [#allocation7], 4294963200  ;;  %v91_v0 = vld [vmem:[#allocation6 + $0x78] sm:$0xff]  ;;  %v90_v1 = vld [vmem:[#allocation6 + $0x70] sm:$0xff]  ;;  %s1158_s21 = smov [#allocation9]   ;;  %s1017_s24 = sshll.u32 %s1795_s7, 4  ;;  %s1018_s24 = int_to_ptr.hbm [resolvable:$true] %s1017_s24 }
   0xf   :  { %v89_v2 = vld [vmem:[#allocation6 + $0x68] sm:$0xff]  ;;  %v1217_v3 = vand.u32 4294901760, %v91_v0  ;;  %v1219_v4 = vand.u32 4294901760, %v90_v1  ;;  %v88_v6 = vld [vmem:[#allocation6 + $0x60] sm:$0xff]  ;;  %v87_v7 = vld [vmem:[#allocation6 + $0x58] sm:$0xff] }
  0x10   :  { %v1221_v5 = vand.u32 4294901760, %v89_v2  ;;  %v86_v8 = vld [vmem:[#allocation6 + $0x50] sm:$0xff]  ;;  %v1223_v9 = vand.u32 4294901760, %v88_v6  ;;  %v1225_v10 = vand.u32 4294901760, %v87_v7  ;;  %v85_v12 = vld [vmem:[#allocation6 + $0x48] sm:$0xff]  ;;  %v84_v13 = vld [vmem:[#allocation6 + $0x40] sm:$0xff] }
  0x11   :  { %v1227_v11 = vand.u32 4294901760, %v86_v8  ;;  %97 = vmatpush.msra.mxu0 %v1217_v3  ;;  %v1231_v14 = vsub.f32 %v91_v0, %v1217_v3  ;;  %v1234_v15 = vsub.f32 %v90_v1, %v1219_v4  ;;  %v1236_v16 = vand.u32 4294901760, %v85_v12  ;;  %v83_v18 = vld [vmem:[#allocation6 + $0x38] sm:$0xff]  ;;  %310 = vmatpush.msra.mxu3 %v1217_v3  ;;  %v82_v25 = vld [vmem:[#allocation6 + $0x30] sm:$0xff]  ;;  %v81_v30 = vld [vmem:[#allocation6 + $0x28] sm:$0xff] }
  0x12   :  { %v1239_v17 = vsub.f32 %v89_v2, %v1221_v5  ;;  %v1243_v19 = vsub.f32 %v88_v6, %v1223_v9  ;;  %v1246_v20 = vsub.f32 %v87_v7, %v1225_v10  ;;  %v1252_v24 = vand.u32 4294901760, %v84_v13  ;;  %v80_v40 = vld [vmem:[#allocation6 + $0x20] sm:$0xff]  ;;  %v79_v46 = vld [vmem:[#allocation6 + $0x18] sm:$0xff]  ;;  %v78_v52 = vld [vmem:[#allocation6 + $0x10] sm:$0xff] }
  0x13   :  { %99 = vmatpush.msra.mxu0 %v1219_v4  ;;  %v147_v21 = vand.u32 4294901760, %v1231_v14  ;;  %v153_v22 = vand.u32 4294901760, %v1234_v15  ;;  %252 = vmatpush.msra.mxu2 %v1231_v14  ;;  %v1256_v27 = vand.u32 4294901760, %v83_v18  ;;  %v1260_v29 = vsub.f32 %v86_v8, %v1227_v11  ;;  %v77_v58 = vld [vmem:[#allocation6 + $0x8] sm:$0xff]  ;;  %v1328_v61 = vld [vmem:[#allocation3] sm:$0xff]  ;;  %v76_v1 = vld [vmem:[#allocation6] sm:$0xff] }
  0x14   :  { %v159_v23 = vand.u32 4294901760, %v1239_v17  ;;  %v165_v26 = vand.u32 4294901760, %v1243_v19  ;;  %v171_v28 = vand.u32 4294901760, %v1246_v20  ;;  %312 = vmatpush.msra.mxu3 %v1219_v4  ;;  %v1274_v34 = vsub.f32 %v85_v12, %v1236_v16 }
  0x15   :  { %101 = vmatpush.msra.mxu0 %v1221_v5  ;;  %v148_v31 = vsub.f32 %v1231_v14, %v147_v21  ;;  %v154_v32 = vsub.f32 %v1234_v15, %v153_v22  ;;  %v1276_v35 = vand.u32 4294901760, %v82_v25  ;;  %255 = vmatpush.msra.mxu2 %v1234_v15  ;;  %v177_v39 = vand.u32 4294901760, %v1260_v29 }
  0x16   :  { %v160_v33 = vsub.f32 %v1239_v17, %v159_v23  ;;  %314 = vmatpush.msra.mxu3 %v1221_v5  ;;  %v166_v38 = vsub.f32 %v1243_v19, %v165_v26  ;;  %v1285_v41 = vand.u32 4294901760, %v81_v30  ;;  %v1288_v42 = vsub.f32 %v84_v13, %v1252_v24 }
  0x17   :  { %103 = vmatpush.msra.mxu0 %v1223_v9  ;;  %v149_v36 = vand.u32 4294901760, %v148_v31  ;;  %v155_v37 = vand.u32 4294901760, %v154_v32  ;;  %258 = vmatpush.msra.mxu2 %v1239_v17  ;;  %v172_v44 = vsub.f32 %v1246_v20, %v171_v28  ;;  %v183_v45 = vand.u32 4294901760, %v1274_v34  ;;  %v1360_v31 = vld [vmem:[#allocation3 + $0x8] sm:$0xff] }
  0x18   :  { %316 = vmatpush.msra.mxu3 %v1223_v9  ;;  %v161_v43 = vand.u32 4294901760, %v160_v33  ;;  %v1298_v47 = vsub.f32 %v83_v18, %v1256_v27  ;;  %v1300_v48 = vand.u32 4294901760, %v80_v40  ;;  %v167_v49 = vand.u32 4294901760, %v166_v38 }
  0x19   :  { %105 = vmatpush.msra.mxu0 %v1225_v10  ;;  %150 = vmatpush.msra.mxu1 %v149_v36  ;;  %v178_v50 = vsub.f32 %v1260_v29, %v177_v39  ;;  %v189_v51 = vand.u32 4294901760, %v1288_v42  ;;  %v1310_v53 = vsub.f32 %v82_v25, %v1276_v35  ;;  %v1312_v54 = vand.u32 4294901760, %v79_v46 }
  0x1a   :  { %261 = vmatpush.msra.mxu2 %v1243_v19  ;;  %318 = vmatpush.msra.mxu3 %v1225_v10  ;;  %v173_v55 = vand.u32 4294901760, %v172_v44  ;;  %v184_v56 = vsub.f32 %v1274_v34, %v183_v45  ;;  %v195_v57 = vand.u32 4294901760, %v1298_v47  ;;  %v1322_v59 = vsub.f32 %v81_v30, %v1285_v41 }
  0x1b   :  { %107 = vmatpush.msra.mxu0 %v1227_v11  ;;  %156 = vmatpush.msra.mxu1 %v155_v37  ;;  %v1324_v60 = vand.u32 4294901760, %v78_v52  ;;  %v179_v62 = vand.u32 4294901760, %v178_v50  ;;  %v190_v63 = vsub.f32 %v1288_v42, %v189_v51  ;;  %v201_v0 = vand.u32 4294901760, %v1310_v53 }
  0x1c   :  { %264 = vmatpush.msra.mxu2 %v1246_v20  ;;  %320 = vmatpush.msra.mxu3 %v1227_v11  ;;  %v1336_v2 = vsub.f32 %v80_v40, %v1300_v48  ;;  %v1338_v6 = vand.u32 4294901760, %v77_v58  ;;  %v1342_v7 = vsub.f32 %v79_v46, %v1312_v54  ;;  %v185_v8 = vand.u32 4294901760, %v184_v56 }
  0x1d   :  { %109 = vmatpush.msra.mxu0 %v1236_v16  ;;  %162 = vmatpush.msra.mxu1 %v161_v43  ;;  %v196_v12 = vsub.f32 %v1298_v47, %v195_v57  ;;  %v207_v13 = vand.u32 4294901760, %v1322_v59  ;;  %v1351_v18 = vand.u32 4294901760, %v1328_v61  ;;  %v1353_v25 = vand.u32 4294901760, %v76_v1 }
  0x1e   :  { %267 = vmatpush.msra.mxu2 %v1260_v29  ;;  %322 = vmatpush.msra.mxu3 %v1236_v16  ;;  %v1357_v30 = vsub.f32 %v78_v52, %v1324_v60  ;;  %v191_v32 = vand.u32 4294901760, %v190_v63  ;;  %v202_v33 = vsub.f32 %v1310_v53, %v201_v0  ;;  %v213_v36 = vand.u32 4294901760, %v1336_v2 }
  0x1f   :  { %111 = vmatpush.msra.mxu0 %v1252_v24  ;;  %168 = vmatpush.msra.mxu1 %v167_v49  ;;  %v1369_v37 = vsub.f32 %v1328_v61, %v1351_v18  ;;  %v1797_v38 = vand.u32 4294901760, %v1342_v7  ;;  %v1374_v40 = vsub.f32 %v77_v58, %v1338_v6  ;;  %v197_v43 = vand.u32 4294901760, %v196_v12 }
  0x20   :  { %270 = vmatpush.msra.mxu2 %v1274_v34  ;;  %324 = vmatpush.msra.mxu3 %v1252_v24  ;;  %v208_v44 = vsub.f32 %v1322_v59, %v207_v13  ;;  %v1383_v49 = vand.u32 4294901760, %v1360_v31  ;;  %v203_v50 = vand.u32 4294901760, %v202_v33  ;;  %v214_v52 = vsub.f32 %v1336_v2, %v213_v36 }
  0x21   :  { %113 = vmatpush.msra.mxu0 %v1256_v27  ;;  %174 = vmatpush.msra.mxu1 %v173_v55  ;;  %v130_v46 = vand.u32 4294901760, %v1369_v37  ;;  %v1796_v55 = vand.u32 4294901760, %v1357_v30  ;;  %v1393_v56 = vsub.f32 %v76_v1, %v1353_v25  ;;  %v231_v58 = vand.u32 4294901760, %v1374_v40 }
  0x22   :  { %273 = vmatpush.msra.mxu2 %v1288_v42  ;;  %326 = vmatpush.msra.mxu3 %v1256_v27  ;;  %v220_v63 = vsub.f32 %v1342_v7, %v1797_v38  ;;  %v137_v1 = vsub.f32 %v1360_v31, %v1383_v49  ;;  %v215_v12 = vand.u32 4294901760, %v214_v52  ;;  %v566_v42 = vld [vmem:[#allocation8 + $0x50] sm:$0xff] }
  0x23   :  { %115 = vmatpush.msra.mxu0 %v1276_v35  ;;  %180 = vmatpush.msra.mxu1 %v179_v62  ;;  %v209_v62 = vand.u32 4294901760, %v208_v44  ;;  %v237_v33 = vand.u32 4294901760, %v1393_v56  ;;  %v232_v44 = vsub.f32 %v1374_v40, %v231_v58 }
  0x24   :  { %276 = vmatpush.msra.mxu2 %v1298_v47  ;;  %328 = vmatpush.msra.mxu3 %v1276_v35  ;;  %v138_v52 = vand.u32 4294901760, %v137_v1 }
  0x25   :  { %117 = vmatpush.msra.mxu0 %v1285_v41  ;;  %186 = vmatpush.msra.mxu1 %v185_v8  ;;  %v131_v8 = vsub.f32 %v1369_v37, %v130_v46  ;;  %v238_v38 = vsub.f32 %v1393_v56, %v237_v33 }
  0x26   :  { %279 = vmatpush.msra.mxu2 %v1310_v53  ;;  %330 = vmatpush.msra.mxu3 %v1285_v41  ;;  %v1524_v53 = vand.u32 4294901760, %v566_v42 }
  0x27   :  { %119 = vmatpush.msra.mxu0 %v1300_v48  ;;  %192 = vmatpush.msra.mxu1 %v191_v32  ;;  %v226_v32 = vsub.f32 %v1357_v30, %v1796_v55 }
  0x28   :  { %282 = vmatpush.msra.mxu2 %v1322_v59  ;;  %332 = vmatpush.msra.mxu3 %v1300_v48  ;;  %v565_v59 = vld [vmem:[#allocation8 + $0x48] sm:$0xff] }
  0x29   :  { %121 = vmatpush.msra.mxu0 %v1312_v54  ;;  %198 = vmatpush.msra.mxu1 %v197_v43  ;;  %v221_v43 = vand.u32 4294901760, %v220_v63  ;;  %v227_v55 = vand.u32 4294901760, %v226_v32  ;;  %v139_v63 = vsub.f32 %v137_v1, %v138_v52 }
  0x2a   :  { %285 = vmatpush.msra.mxu2 %v1336_v2  ;;  %334 = vmatpush.msra.mxu3 %v1312_v54  ;;  %v1541_v2 = vsub.f32 %v566_v42, %v1524_v53 }
  0x2b   :  { %123 = vmatpush.msra.mxu0 %v1324_v60  ;;  %204 = vmatpush.msra.mxu1 %v203_v50  ;;  %v132_v50 = vand.u32 4294901760, %v131_v8  ;;  %v239_v8 = vand.u32 4294901760, %v238_v38  ;;  %v140_v14 = vand.u32 4294901760, %v139_v63  ;;  %v561_v63 = vld [vmem:[#allocation8 + $0x28] sm:$0xff] }
  0x2c   :  { %288 = vmatpush.msra.mxu2 %v1342_v7  ;;  %336 = vmatpush.msra.mxu3 %v1324_v60 }
  0x2d   :  { %125 = vmatpush.msra.mxu0 %v1338_v6  ;;  %210 = vmatpush.msra.mxu1 %v209_v62  ;;  %v233_v62 = vand.u32 4294901760, %v232_v44 }
  0x2e   :  { %291 = vmatpush.msra.mxu2 %v1357_v30  ;;  %338 = vmatpush.msra.mxu3 %v1338_v6 }
  0x2f   :  { %127 = vmatpush.msra.mxu0 %v1353_v25  ;;  %216 = vmatpush.msra.mxu1 %v215_v12  ;;  %v562_v12 = vld [vmem:[#allocation8 + $0x30] sm:$0xff] }
  0x30   :  { %294 = vmatpush.msra.mxu2 %v1374_v40  ;;  %133 = vmatmul.f32.vlgmr.msra.gmra.mxu0 %v132_v50 }
  0x31   :  { %357 = vmatpush.msrb.mxu0 %v147_v21  ;;  %222 = vmatpush.msra.mxu1 %v221_v43 }
  0x32   :  { %297 = vmatpush.msra.mxu2 %v1393_v56  ;;  %340 = vmatpush.msra.mxu3 %v1353_v25 }
  0x33   :  { %361 = vmatpush.msrb.mxu0 %v153_v22  ;;  %228 = vmatpush.msra.mxu1 %v227_v55  ;;  %v568_v22 = vld [vmem:[#allocation8 + $0x60] sm:$0xff] }
  0x34   :  { %300 = vmatmul.f32.vlgmr.msra.gmra.mxu2 %v1369_v37  ;;  %344 = vmatmul.f32.vlgmr.msra.gmra.mxu3 %v130_v46  ;;  %v563_v46 = vld [vmem:[#allocation8 + $0x38] sm:$0xff] }
  0x35   :  { %365 = vmatpush.msrb.mxu0 %v159_v23  ;;  %234 = vmatpush.msra.mxu1 %v233_v62  ;;  %v1581_v62 = vand.u32 4294901760, %v562_v12 }
  0x37   :  { %369 = vmatpush.msrb.mxu0 %v165_v26  ;;  %240 = vmatpush.msra.mxu1 %v239_v8 }
  0x38   :  { %141 = vmatmul.f32.gmra.mxu0 %v140_v14  ;;  %242 = vmatmul.f32.vlgmr.msra.gmra.mxu1 %v1351_v18 }
  0x39   :  { %373 = vmatpush.msrb.mxu0 %v171_v28  ;;  %428 = vmatpush.msrb.mxu1 %v1217_v3  ;;  %v1798_v3 = vand.u32 4294901760, %v1342_v7  ;;  %v567_v28 = vld [vmem:[#allocation8 + $0x58] sm:$0xff] }
  0x3b   :  { %377 = vmatpush.msrb.mxu0 %v177_v39  ;;  %430 = vmatpush.msrb.mxu1 %v1219_v4  ;;  %v1799_v4 = vand.u32 4294901760, %v1357_v30  ;;  %v657_v30 = vand.u32 4294901760, %v1541_v2 }
  0x3c   :  { %305 = vmatmul.f32.gmra.mxu2 %v137_v1  ;;  %350 = vmatmul.f32.gmra.mxu3 %v138_v52 }
  0x3d   :  { %381 = vmatpush.msrb.mxu0 %v183_v45  ;;  %432 = vmatpush.msrb.mxu1 %v1221_v5  ;;  %v571_v5 = vld [vmem:[#allocation8 + $0x78] sm:$0xff] }
  0x3f   :  { %385 = vmatpush.msrb.mxu0 %v189_v51  ;;  %434 = vmatpush.msrb.mxu1 %v1223_v9  ;;  %v1478_v9 = vand.u32 4294901760, %v571_v5 }
  0x40   :  { %246 = vmatmul.f32.gmra.mxu1 %v1383_v49 }
  0x41   :  { %389 = vmatpush.msrb.mxu0 %v195_v57  ;;  %436 = vmatpush.msrb.mxu1 %v1225_v10  ;;  %v570_v10 = vld [vmem:[#allocation8 + $0x70] sm:$0xff] }
  0x42   :  { %v1483_v15 = vand.u32 4294901760, %v570_v10  ;;  %577 = vmatpush.msrb.mxu2 %v1478_v9 }
  0x43   :  { %393 = vmatpush.msrb.mxu0 %v201_v0  ;;  %438 = vmatpush.msrb.mxu1 %v1227_v11  ;;  %v1481_v11 = vsub.f32 %v571_v5, %v1478_v9  ;;  %v1588_v5 = vand.u32 4294901760, %v561_v63 }
  0x44   :  { %v1489_v20 = vsub.f32 %v570_v10, %v1483_v15  ;;  %579 = vmatpush.msrb.mxu2 %v1483_v15  ;;  %v1593_v10 = vsub.f32 %v562_v12, %v1581_v62 }
  0x45   :  { %397 = vmatpush.msrb.mxu0 %v207_v13  ;;  %440 = vmatpush.msrb.mxu1 %v1236_v16  ;;  %v569_v16 = vld [vmem:[#allocation8 + $0x68] sm:$0xff]  ;;  %v627_v19 = vand.u32 4294901760, %v1481_v11  ;;  %v564_v13 = vld [vmem:[#allocation8 + $0x40] sm:$0xff] }
  0x46   :  { %v1491_v21 = vand.u32 4294901760, %v569_v16  ;;  %v1552_v37 = vand.u32 4294901760, %v564_v13 }
  0x47   :  { %401 = vmatpush.msrb.mxu0 %v213_v36  ;;  %442 = vmatpush.msrb.mxu1 %v1252_v24  ;;  %v628_v23 = vsub.f32 %v1481_v11, %v627_v19  ;;  %v633_v24 = vand.u32 4294901760, %v1489_v20 }
  0x48   :  { %v1501_v26 = vsub.f32 %v569_v16, %v1491_v21  ;;  %581 = vmatpush.msrb.mxu2 %v1491_v21  ;;  %v1566_v56 = vsub.f32 %v564_v13, %v1552_v37  ;;  %v560_v16 = vld [vmem:[#allocation8 + $0x20] sm:$0xff] }
  0x49   :  { %405 = vmatpush.msrb.mxu0 %v1798_v3  ;;  %444 = vmatpush.msrb.mxu1 %v1256_v27  ;;  %v1503_v27 = vand.u32 4294901760, %v568_v22  ;;  %v629_v29 = vand.u32 4294901760, %v628_v23  ;;  %v634_v34 = vsub.f32 %v1489_v20, %v633_v24 }
  0x4a   :  { %v669_v44 = vand.u32 4294901760, %v1566_v56 }
  0x4b   :  { %409 = vmatpush.msrb.mxu0 %v1799_v4  ;;  %446 = vmatpush.msrb.mxu1 %v1276_v35  ;;  %v639_v35 = vand.u32 4294901760, %v1501_v26  ;;  %v1513_v39 = vsub.f32 %v568_v22, %v1503_v27  ;;  %v635_v47 = vand.u32 4294901760, %v634_v34 }
  0x4c   :  { %583 = vmatpush.msrb.mxu2 %v1503_v27  ;;  %630 = vmatpush.msrb.mxu3 %v629_v29  ;;  %v670_v3 = vsub.f32 %v1566_v56, %v669_v44  ;;  %v1602_v29 = vand.u32 4294901760, %v560_v16 }
  0x4d   :  { %413 = vmatpush.msrb.mxu0 %v231_v58  ;;  %448 = vmatpush.msrb.mxu1 %v1285_v41  ;;  %v1517_v41 = vand.u32 4294901760, %v567_v28  ;;  %v645_v51 = vand.u32 4294901760, %v1513_v39  ;;  %v1568_v58 = vand.u32 4294901760, %v563_v46 }
  0x4e   :  { %636 = vmatpush.msrb.mxu3 %v635_v47  ;;  %v671_v22 = vand.u32 4294901760, %v670_v3  ;;  %v559_v47 = vld [vmem:[#allocation8 + $0x18] sm:$0xff] }
  0x4f   :  { %417 = vmatpush.msrb.mxu0 %v237_v33  ;;  %450 = vmatpush.msrb.mxu1 %v1300_v48  ;;  %v640_v48 = vsub.f32 %v1501_v26, %v639_v35  ;;  %v1533_v57 = vsub.f32 %v567_v28, %v1517_v41  ;;  %v646_v0 = vsub.f32 %v1513_v39, %v645_v51  ;;  %v1613_v13 = vand.u32 4294901760, %v559_v47 }
  0x50   :  { %419 = vmatmul.f32.vlgmr.msrb.gmra.mxu0 %v1351_v18  ;;  %585 = vmatpush.msrb.mxu2 %v1517_v41  ;;  %v1578_v50 = vsub.f32 %v563_v46, %v1568_v58  ;;  %v1600_v28 = vsub.f32 %v561_v63, %v1588_v5 }
  0x51   :  { %452 = vmatpush.msrb.mxu1 %v1312_v54  ;;  %732 = vmatpush.msra.mxu0 %v1481_v11  ;;  %v1530_v54 = vld [vmem:[%s1790_s2] ss:$0 sm:$0xff]  ;;  %v651_v7 = vand.u32 4294901760, %v1533_v57 }
  0x52   :  { %587 = vmatpush.msrb.mxu2 %v1524_v53  ;;  %v675_v4 = vand.u32 4294901760, %v1578_v50 }
  0x53   :  { %454 = vmatpush.msrb.mxu1 %v1324_v60  ;;  %735 = vmatpush.msra.mxu0 %v1489_v20  ;;  %v641_v60 = vand.u32 4294901760, %v640_v48  ;;  %v652_v40 = vsub.f32 %v1533_v57, %v651_v7 }
  0x54   :  { %v676_v23 = vsub.f32 %v1578_v50, %v675_v4 }
  0x55   :  { %456 = vmatpush.msrb.mxu1 %v1338_v6  ;;  %738 = vmatpush.msra.mxu0 %v1501_v26  ;;  %v1543_v6 = vand.u32 4294901760, %v565_v59  ;;  %v653_v1 = vand.u32 4294901760, %v652_v40  ;;  %v1626_v40 = vsub.f32 %v559_v47, %v1613_v13 }
  0x56   :  { %642 = vmatpush.msrb.mxu3 %v641_v60  ;;  %v687_v60 = vand.u32 4294901760, %v1600_v28 }
  0x57   :  { %458 = vmatpush.msrb.mxu1 %v1353_v25  ;;  %741 = vmatpush.msra.mxu0 %v1513_v39  ;;  %v647_v25 = vand.u32 4294901760, %v646_v0  ;;  %v1550_v36 = vsub.f32 %v565_v59, %v1543_v6  ;;  %v677_v59 = vand.u32 4294901760, %v676_v23  ;;  %v1611_v0 = vsub.f32 %v560_v16, %v1602_v29  ;;  %v556_v16 = vld [vmem:[#allocation8] sm:$0xff] }
  0x58   :  { %423 = vmatmul.f32.gmra.mxu0 %v1383_v49  ;;  %460 = vmatmul.f32.vlgmr.msrb.gmra.mxu1 %v1351_v18  ;;  %v699_v63 = vand.u32 4294901760, %v1626_v40 }
  0x59   :  { %790 = vmatpush.msra.mxu1 %v1478_v9  ;;  %744 = vmatpush.msra.mxu0 %v1533_v57  ;;  %v663_v55 = vand.u32 4294901760, %v1550_v36 }
  0x5a   :  { %589 = vmatpush.msrb.mxu2 %v1543_v6  ;;  %648 = vmatpush.msrb.mxu3 %v647_v25  ;;  %v688_v25 = vsub.f32 %v1600_v28, %v687_v60  ;;  %v700_v23 = vsub.f32 %v1626_v40, %v699_v63 }
  0x5b   :  { %792 = vmatpush.msra.mxu1 %v1483_v15  ;;  %747 = vmatpush.msra.mxu0 %v1541_v2  ;;  %v664_v43 = vsub.f32 %v1550_v36, %v663_v55 }
  0x5c   :  { %591 = vmatpush.msrb.mxu2 %v1552_v37  ;;  %654 = vmatpush.msrb.mxu3 %v653_v1 }
  0x5d   :  { %794 = vmatpush.msra.mxu1 %v1491_v21  ;;  %750 = vmatpush.msra.mxu0 %v1550_v36  ;;  %v665_v14 = vand.u32 4294901760, %v664_v43  ;;  %v689_v43 = vand.u32 4294901760, %v688_v25 }
  0x5e   :  { %593 = vmatpush.msrb.mxu2 %v1568_v58 }
  0x5f   :  { %796 = vmatpush.msra.mxu1 %v1503_v27  ;;  %753 = vmatpush.msra.mxu0 %v1566_v56 }
  0x60   :  { %464 = vmatmul.f32.gmra.mxu1 %v1383_v49  ;;  %v658_v49 = vsub.f32 %v1541_v2, %v657_v30  ;;  %595 = vmatpush.msrb.mxu2 %v1581_v62 }
  0x61   :  { %798 = vmatpush.msra.mxu1 %v1517_v41  ;;  %756 = vmatpush.msra.mxu0 %v1578_v50 }
  0x62   :  { %v659_v33 = vand.u32 4294901760, %v658_v49  ;;  %597 = vmatpush.msrb.mxu2 %v1588_v5 }
  0x63   :  { %800 = vmatpush.msra.mxu1 %v1524_v53  ;;  %759 = vmatpush.msra.mxu0 %v1593_v10 }
  0x64   :  { %660 = vmatpush.msrb.mxu3 %v659_v33  ;;  %599 = vmatpush.msrb.mxu2 %v1602_v29 }
  0x65   :  { %802 = vmatpush.msra.mxu1 %v1543_v6  ;;  %762 = vmatpush.msra.mxu0 %v1600_v28 }
  0x66   :  { %666 = vmatpush.msrb.mxu3 %v665_v14  ;;  %601 = vmatpush.msrb.mxu2 %v1613_v13 }
  0x67   :  { %804 = vmatpush.msra.mxu1 %v1552_v37  ;;  %765 = vmatpush.msra.mxu0 %v1611_v0 }
  0x68   :  { %672 = vmatpush.msrb.mxu3 %v671_v22 }
  0x69   :  { %806 = vmatpush.msra.mxu1 %v1568_v58  ;;  %768 = vmatpush.msra.mxu0 %v1626_v40 }
  0x6a   :  { %678 = vmatpush.msrb.mxu3 %v677_v59 }
  0x6b   :  { %808 = vmatpush.msra.mxu1 %v1581_v62 }
  0x6d   :  { %810 = vmatpush.msra.mxu1 %v1588_v5 }
  0x6f   :  { %812 = vmatpush.msra.mxu1 %v1602_v29 }
  0x71   :  { %814 = vmatpush.msra.mxu1 %v1613_v13 }
  0xad   :  { %v134_v17 = vpop.f32.mrf.mxu0 }
  0xae   :  { %v135_v38 = vadd.f32 %v1530_v54, %v134_v17 }
  0xb5   :  { %v243_v45 = vpop.f32.mrf.mxu1  ;;  %v142_v18 = vpop.f32.mrf.mxu0 }
  0xb6   :  { %v244_v52 = vadd.f32 %v243_v45, %v135_v38  ;;  %v143_v34 = vadd.f32 %v1530_v54, %v142_v18  ;;  %v681_v45 = vand.u32 4294901760, %v1593_v10  ;;  %v558_v18 = vld [vmem:[#allocation8 + $0x10] sm:$0xff]  ;;  %v693_v38 = vand.u32 4294901760, %v1611_v0 }
  0xb7   :  { %v301_v32 = vpop.f32.mrf.mxu2  ;;  %v345_v17 = vpop.f32.mrf.mxu3  ;;  %v1628_v46 = vand.u32 4294901760, %v558_v18 }
  0xb8   :  { %v302_v42 = vadd.f32 %v301_v32, %v244_v52  ;;  %v682_v54 = vsub.f32 %v1593_v10, %v681_v45  ;;  %v557_v32 = vld [vmem:[#allocation8 + $0x8] sm:$0xff]  ;;  %v694_v52 = vsub.f32 %v1611_v0, %v693_v38 }
  0xb9   :  { %v1638_v14 = vsub.f32 %v558_v18, %v1628_v46  ;;  %v1642_v3 = vand.u32 4294901760, %v557_v32  ;;  %603 = vmatpush.msrb.mxu2 %v1628_v46  ;;  %816 = vmatpush.msra.mxu1 %v1628_v46  ;;  %v701_v18 = vand.u32 4294901760, %v700_v23 }
  0xba   :  { %v346_v49 = vadd.f32 %v345_v17, %v302_v42  ;;  %v683_v12 = vand.u32 4294901760, %v682_v54  ;;  %v695_v22 = vand.u32 4294901760, %v694_v52  ;;  %v1649_v42 = vand.u32 4294901760, %v556_v16 }
  0xbb   :  { %v1656_v59 = vsub.f32 %v557_v32, %v1642_v3  ;;  %605 = vmatpush.msrb.mxu2 %v1642_v3  ;;  %771 = vmatpush.msra.mxu0 %v1638_v14 }
  0xbc   :  { %684 = vmatpush.msrb.mxu3 %v683_v12  ;;  %818 = vmatpush.msra.mxu1 %v1642_v3 }
  0xbd   :  { %v247_v8 = vpop.f32.mrf.mxu1  ;;  %v711_v12 = vand.u32 4294901760, %v1656_v59  ;;  %607 = vmatpush.msrb.mxu2 %v1649_v42  ;;  %774 = vmatpush.msra.mxu0 %v1656_v59 }
  0xbe   :  { %v248_v1 = vadd.f32 %v247_v8, %v143_v34  ;;  %v705_v34 = vand.u32 4294901760, %v1638_v14  ;;  %690 = vmatpush.msrb.mxu3 %v689_v43  ;;  %820 = vmatpush.msra.mxu1 %v1649_v42 }
  0xbf   :  { %v306_v33 = vpop.f32.mrf.mxu2  ;;  %v351_v54 = vpop.f32.mrf.mxu3  ;;  %837 = vmatpush.msra.mxu2 %v627_v19 }
  0xc0   :  { %v307_v47 = vadd.f32 %v306_v33, %v248_v1  ;;  %v706_v25 = vsub.f32 %v1638_v14, %v705_v34  ;;  %696 = vmatpush.msrb.mxu3 %v695_v22 }
  0xc1   :  { %841 = vmatpush.msra.mxu2 %v633_v24 }
  0xc2   :  { %v707_v33 = vand.u32 4294901760, %v706_v25  ;;  %v352_v52 = vadd.f32 %v351_v54, %v307_v47  ;;  %702 = vmatpush.msrb.mxu3 %v701_v18 }
  0xc3   :  { %845 = vmatpush.msra.mxu2 %v639_v35 }
  0xc4   :  { %708 = vmatpush.msrb.mxu3 %v707_v33 }
  0xc5   :  { %849 = vmatpush.msra.mxu2 %v645_v51 }
  0xc7   :  { %853 = vmatpush.msra.mxu2 %v651_v7 }
  0xc9   :  { %857 = vmatpush.msra.mxu2 %v657_v30 }
  0xcb   :  { %861 = vmatpush.msra.mxu2 %v663_v55 }
  0xcd   :  { %v420_v48 = vpop.f32.mrf.mxu0  ;;  %865 = vmatpush.msra.mxu2 %v669_v44 }
  0xce   :  { %v421_v8 = vadd.f32 %v420_v48, %v346_v49  ;;  %v1663_v49 = vsub.f32 %v556_v16, %v1649_v42  ;;  %v712_v16 = vsub.f32 %v1656_v59, %v711_v12 }
  0xcf   :  { %869 = vmatpush.msra.mxu2 %v675_v4 }
  0xd0   :  { %v717_v43 = vand.u32 4294901760, %v1663_v49  ;;  %777 = vmatpush.msra.mxu0 %v1663_v49  ;;  %v713_v22 = vand.u32 4294901760, %v712_v16 }
  0xd1   :  { %873 = vmatpush.msra.mxu2 %v681_v45 }
  0xd2   :  { %714 = vmatpush.msrb.mxu3 %v713_v22 }
  0xd3   :  { %877 = vmatpush.msra.mxu2 %v687_v60 }
  0xd5   :  { %v461_v17 = vpop.f32.mrf.mxu1  ;;  %v424_v32 = vpop.f32.mrf.mxu0  ;;  %881 = vmatpush.msra.mxu2 %v693_v38 }
  0xd6   :  { %v1653_v48 = vadd.f32 %v461_v17, %v421_v8  ;;  %v718_v17 = vsub.f32 %v1663_v49, %v717_v43  ;;  %v425_v11 = vadd.f32 %v424_v32, %v352_v52 }
  0xd7   :  { %885 = vmatpush.msra.mxu2 %v699_v63 }
  0xd8   :  { %v1668_v1 = vmul.f32 0.70710677, %v1653_v48  ;;  %v719_v47 = vand.u32 4294901760, %v718_v17 }
  0xd9   :  { %889 = vmatpush.msra.mxu2 %v705_v34 }
  0xda   :  { %v472_v8 = vmul.f32 %v1668_v1, %v1668_v1  ;;  %720 = vmatpush.msrb.mxu3 %v719_v47 }
  0xdb   :  { %893 = vmatpush.msra.mxu2 %v711_v12 }
  0xdc   :  { %v1688_v19 = vmin.f32 %v472_v8, 16.0  ;;  %908 = vmatpush.msra.mxu3 %v1478_v9 }
  0xdd   :  { %v465_v23 = vpop.f32.mrf.mxu1  ;;  %897 = vmatpush.msra.mxu2 %v717_v43 }
  0xde   :  { %v474_v54 = vmul.f32 2.1237322e-06, %v1688_v19  ;;  %v485_v18 = vmul.f32 3.8918573e-05, %v1688_v19  ;;  %v1694_v25 = vadd.f32 %v465_v23, %v425_v11  ;;  %910 = vmatpush.msra.mxu3 %v1483_v15 }
  0xe0   :  { %v475_v20 = vadd.f32 0.00028619796, %v474_v54  ;;  %v486_v24 = vadd.f32 0.001143296, %v485_v18  ;;  %v1699_v32 = vmul.f32 0.70710677, %v1694_v25  ;;  %912 = vmatpush.msra.mxu3 %v1491_v21 }
  0xe2   :  { %v476_v26 = vmul.f32 %v475_v20, %v1688_v19  ;;  %v487_v35 = vmul.f32 %v486_v24, %v1688_v19  ;;  %v512_v33 = vmul.f32 %v1699_v32, %v1699_v32  ;;  %914 = vmatpush.msra.mxu3 %v1503_v27 }
  0xe4   :  { %v488_v39 = vadd.f32 0.014752088, %v487_v35  ;;  %v477_v51 = vadd.f32 0.0036580483, %v476_v26  ;;  %v1711_v52 = vmin.f32 %v512_v33, 16.0  ;;  %916 = vmatpush.msra.mxu3 %v1517_v41 }
  0xe6   :  { %v489_v9 = vmul.f32 %v488_v39, %v1688_v19  ;;  %v514_v57 = vmul.f32 2.1237322e-06, %v1711_v52  ;;  %v525_v7 = vmul.f32 3.8918573e-05, %v1711_v52  ;;  %v478_v2 = vmul.f32 %v477_v51, %v1688_v19  ;;  %918 = vmatpush.msra.mxu3 %v1524_v53 }
  0xe8   :  { %v490_v15 = vadd.f32 0.112945676, %v489_v9  ;;  %v515_v30 = vadd.f32 0.00028619796, %v514_v57  ;;  %v526_v8 = vadd.f32 0.001143296, %v525_v7  ;;  %920 = vmatpush.msra.mxu3 %v1543_v6 }
  0xe9   :  { %v479_v56 = vadd.f32 0.05243302, %v478_v2 }
  0xea   :  { %v491_v21 = vmul.f32 %v490_v15, %v1688_v19  ;;  %v516_v36 = vmul.f32 %v515_v30, %v1711_v52  ;;  %v527_v55 = vmul.f32 %v526_v8, %v1711_v52  ;;  %922 = vmatpush.msra.mxu3 %v1552_v37 }
  0xeb   :  { %v480_v10 = vmul.f32 %v479_v56, %v1688_v19 }
  0xec   :  { %v492_v27 = vadd.f32 0.4994258, %v491_v21  ;;  %v528_v44 = vadd.f32 0.014752088, %v527_v55  ;;  %v517_v50 = vadd.f32 0.0036580483, %v516_v36  ;;  %924 = vmatpush.msra.mxu3 %v1568_v58 }
  0xed   :  { %v481_v37 = vadd.f32 0.18741608, %v480_v10 }
  0xee   :  { %v493_v41 = vmul.f32 %v492_v27, %v1688_v19  ;;  %v529_v4 = vmul.f32 %v528_v44, %v1711_v52  ;;  %v518_v6 = vmul.f32 %v517_v50, %v1711_v52  ;;  %926 = vmatpush.msra.mxu3 %v1581_v62 }
  0xef   :  { %v482_v62 = vmul.f32 %v481_v37, %v1688_v19 }
  0xf0   :  { %v494_v53 = vadd.f32 1.0, %v493_v41  ;;  %v530_v45 = vadd.f32 0.112945676, %v529_v4  ;;  %928 = vmatpush.msra.mxu3 %v1588_v5  ;;  %v519_v58 = vadd.f32 0.05243302, %v518_v6 }
  0xf1   :  { %v483_v59 = vadd.f32 1.1283791, %v482_v62  ;;  %v1040_v41 = vld [vmem:[%s1792_s4] ss:$0 sm:$0xff] }
  0xf2   :  { %1043 = vrcp.f32 %v494_v53  ;;  %v531_v28 = vmul.f32 %v530_v45, %v1711_v52  ;;  %930 = vmatpush.msra.mxu3 %v1602_v29  ;;  %v520_v5 = vmul.f32 %v519_v58, %v1711_v52  ;;  %v506_v34 = vand.u32 2147483648, %v494_v53 }
  0xf3   :  { %v504_v29 = vand.u32 2147483647, %v494_v53  ;;  %vm500_vm1 = vweird.f32 %v494_v53  ;;  %v484_v17 = vmul.f32 %v483_v59, %v1668_v1  ;;  %v952_v58 = vlaneseq }
  0xf4   :  { %v532_v60 = vadd.f32 0.4994258, %v531_v28  ;;  %932 = vmatpush.msra.mxu3 %v1613_v13  ;;  %v521_v49 = vadd.f32 0.18741608, %v520_v5  ;;  %v507_v13 = vor.u32 1.1754944e-38, %v506_v34 }
  0xf5   :  { %vm505_vm3 = vcmp.eq.f32.partialorder %v504_v29, 8.507059e+37 }
  0xf6   :  { %v533_v0 = vmul.f32 %v532_v60, %v1711_v52  ;;  %934 = vmatpush.msra.mxu3 %v1628_v46  ;;  %v522_v19 = vmul.f32 %v521_v49, %v1711_v52 }
  0xf8   :  { %v1044_v38 = vpop.eup %1043  ;;  %v534_v63 = vadd.f32 1.0, %v533_v0  ;;  %936 = vmatpush.msra.mxu3 %v1642_v3  ;;  %v523_v18 = vadd.f32 1.1283791, %v522_v19 }
  0xf9   :  { %v496_v40 = vmul.f32 %v1044_v38, %v494_v53  ;;  %vm501_vm0 = vweird.f32 %v1044_v38 }
  0xfa   :  { %1045 = vrcp.f32 %v534_v63  ;;  %938 = vmatpush.msra.mxu3 %v1649_v42  ;;  %vm502_vm2 = vmor %vm500_vm1, %vm501_vm0  ;;  %v546_v3 = vand.u32 2147483648, %v534_v63  ;;  %v544_v24 = vand.u32 2147483647, %v534_v63  ;;  %v468_v42 = vmul.f32 0.5, %v1653_v48 }
  0xfb   :  { %v497_v14 = vsub.f32 1.0, %v496_v40  ;;  %vm540_vm5 = vweird.f32 %v534_v63  ;;  %v524_v39 = vmul.f32 %v523_v18, %v1699_v32  ;;  %v469_v48 = vmul.f32 0.5, %v1694_v25 }
  0xfc   :  { %v547_v33 = vor.u32 1.1754944e-38, %v546_v3  ;;  %vm545_vm7 = vcmp.eq.f32.partialorder %v544_v24, 8.507059e+37 }
  0xfd   :  { %v498_v12 = vmul.f32 %v1044_v38, %v497_v14 }
  0xff   :  { %v499_v43 = vadd.f32 %v1044_v38, %v498_v12 }
 0x100   :  { %v1046_v16 = vpop.eup %1045 }
 0x101   :  { %v503_v11 = vsel %vm502_vm2, %v1044_v38, %v499_v43  ;;  %v536_v22 = vmul.f32 %v1046_v16, %v534_v63  ;;  %vm541_vm4 = vweird.f32 %v1046_v16  ;;  %v953_v63 = vand.u32 127, %v952_v58 }
 0x102   :  { %v508_v46 = vsel %vm505_vm3, %v507_v13, %v503_v11  ;;  %vm542_vm6 = vmor %vm540_vm5, %vm541_vm4 }
 0x103   :  { %v509_v23 = vmul.f32 %v508_v46, %v484_v17  ;;  %v537_v47 = vsub.f32 1.0, %v536_v22  ;;  %vm954_vm8 = vcmp.lt.s32.totalorder %v953_v63, 32 }
 0x105   :  { %v1031_v54 = vclamps-f32 %v509_v23, 1.0  ;;  %v538_v20 = vmul.f32 %v1046_v16, %v537_v47 }
 0x107   :  { %v552_v26 = vadd.f32 1.0, %v1031_v54  ;;  %v539_v35 = vadd.f32 %v1046_v16, %v538_v20 }
 0x109   :  { %v554_v1 = vmul.f32 %v552_v26, %v468_v42  ;;  %v543_v51 = vsel %vm542_vm6, %v1046_v16, %v539_v35 }
 0x10a   :  { %v548_v9 = vsel %vm545_vm7, %v547_v33, %v543_v51 }
 0x10b   :  { %v608_v52 = vand.u32 4294901760, %v554_v1  ;;  %v549_v57 = vmul.f32 %v548_v9, %v524_v39 }
 0x10d   :  { %v609_v7 = vsub.f32 %v554_v1, %v608_v52  ;;  %722 = vmatmul.f32.vlgmr.msrb.gmra.mxu3 %v608_v52  ;;  %v1032_v15 = vclamps-f32 %v549_v57, 1.0 }
 0x10f   :  { %780 = vmatmul.f32.vlgmr.msra.gmra.mxu0 %v609_v7  ;;  %v610_v2 = vand.u32 4294901760, %v609_v7  ;;  %v553_v30 = vadd.f32 1.0, %v1032_v15 }
 0x111   :  { %824 = vmatmul.f32.vlgmr.msra.gmra.mxu1 %v610_v2  ;;  %v611_v8 = vsub.f32 %v609_v7, %v610_v2  ;;  %v555_v21 = vmul.f32 %v553_v30, %v469_v48  ;;  %v1041_v30 = vld [vmem:[%s1793_s5] ss:$0 sm:$0xff]  ;;  %s1015_s5 = sshll.u32 %s1158_s21, 4  ;;  %s1016_s5 = int_to_ptr.vmem [resolvable:$true] %s1015_s5 }
 0x113   :  { %v612_v36 = vand.u32 4294901760, %v611_v8  ;;  %v616_v55 = vand.u32 4294901760, %v555_v21 }
 0x115   :  { %613 = vmatmul.f32.vlgmr.msrb.gmra.mxu2 %v612_v36  ;;  %726 = vmatmul.f32.gmra.mxu3 %v616_v55  ;;  %v617_v32 = vsub.f32 %v555_v21, %v616_v55 }
 0x117   :  { %785 = vmatmul.f32.gmra.mxu0 %v617_v32  ;;  %v618_v27 = vand.u32 4294901760, %v617_v32 }
 0x119   :  { %830 = vmatmul.f32.gmra.mxu1 %v618_v27  ;;  %v619_v56 = vsub.f32 %v617_v32, %v618_v27 }
 0x11b   :  { %v620_v44 = vand.u32 4294901760, %v619_v56 }
 0x11d   :  { %621 = vmatmul.f32.gmra.mxu2 %v620_v44  ;;  %940 = vmatmul.f32.vlgmr.msra.gmra.mxu3 %v608_v52 }
 0x125   :  { %899 = vmatmul.f32.vlgmr.msra.gmra.mxu2 %v608_v52  ;;  %944 = vmatmul.f32.gmra.mxu3 %v616_v55 }
 0x12d   :  { %903 = vmatmul.f32.gmra.mxu2 %v616_v55  ;;  %v1042_v55 = vld [vmem:[%s1794_s6] ss:$0 sm:$0xff] }
 0x18c   :  { %v781_v45 = vpop.f32.mrf.mxu0 }
 0x18e   :  { %v825_v60 = vpop.f32.mrf.mxu1 }
 0x190   :  { %v723_v25 = vpop.f32.mrf.mxu3 }
 0x194   :  { %v786_v14 = vpop.f32.mrf.mxu0 }
 0x196   :  { %v831_v29 = vpop.f32.mrf.mxu1 }
 0x198   :  { %v614_v50 = vpop.f32.mrf.mxu2  ;;  %v727_v53 = vpop.f32.mrf.mxu3 }
 0x199   :  { %v615_v4 = vadd.f32 %v1040_v41, %v614_v50 }
 0x19b   :  { %v724_v10 = vadd.f32 %v723_v25, %v615_v4 }
 0x19d   :  { %v782_v37 = vadd.f32 %v781_v45, %v724_v10 }
 0x19f   :  { %v826_v38 = vadd.f32 %v825_v60, %v782_v37 }
 0x1a0   :  { %v622_v6 = vpop.f32.mrf.mxu2  ;;  %v941_v62 = vpop.f32.mrf.mxu3 }
 0x1a1   :  { %v623_v28 = vadd.f32 %v1040_v41, %v622_v6 }
 0x1a3   :  { %v728_v0 = vadd.f32 %v727_v53, %v623_v28 }
 0x1a5   :  { %v787_v59 = vadd.f32 %v786_v14, %v728_v0 }
 0x1a7   :  { %v832_v49 = vadd.f32 %v831_v29, %v787_v59 }
 0x1a8   :  { %v900_v40 = vpop.f32.mrf.mxu2  ;;  %v945_v17 = vpop.f32.mrf.mxu3 }
 0x1a9   :  { %v901_v5 = vadd.f32 %v900_v40, %v826_v38 }
 0x1ab   :  { %v942_v34 = vadd.f32 %v941_v62, %v901_v5 }
 0x1ad   :  { %v948_v12 = vadd.f32 %v942_v34, %v1328_v61 }
 0x1af   :  { %v955_v43 = vsel %vm954_vm8, %v948_v12, 0.0 }
 0x1b0   :  { %v904_v13 = vpop.f32.mrf.mxu2  ;;  %957 = vadd.xlane.f32.xlu0 %v955_v43 }
 0x1b1   :  { %v905_v16 = vadd.f32 %v904_v13, %v832_v49 }
 0x1b3   :  { %v946_v11 = vadd.f32 %v945_v17, %v905_v16 }
 0x1b5   :  { %v949_v46 = vadd.f32 %v946_v11, %v1360_v31 }
 0x1b7   :  { %v956_v19 = vsel %vm954_vm8, %v949_v46, 0.0 }
 0x1b8   :  { %959 = vadd.xlane.f32.xlu0 %v956_v19 }
 0x223   :  { %v958_v22 = vpop.xlane.xlu0 %957 }
 0x224   :  { %v961_v23 = vmul.f32 0.03125, %v958_v22 }
 0x226   :  { %v963_v47 = vsub.f32 %v948_v12, %v961_v23 }
 0x228   :  { %v965_v54 = vsel %vm954_vm8, %v963_v47, 0.0 }
 0x229   :  { %v967_v61 = vmul.f32 %v965_v54, %v965_v54 }
 0x22b   :  { %969 = vadd.xlane.f32.xlu1 %v967_v61  ;;  %v960_v3 = vpop.xlane.xlu0 %959 }
 0x22c   :  { %v962_v18 = vmul.f32 0.03125, %v960_v3 }
 0x22e   :  { %v964_v20 = vsub.f32 %v949_v46, %v962_v18 }
 0x230   :  { %v966_v24 = vsel %vm954_vm8, %v964_v20, 0.0 }
 0x231   :  { %v968_v42 = vmul.f32 %v966_v24, %v966_v24 }
 0x233   :  { %971 = vadd.xlane.f32.xlu1 %v968_v42 }
 0x29e   :  { %v970_v26 = vpop.xlane.xlu1 %969 }
 0x29f   :  { %v973_v35 = vmul.f32 0.03125, %v970_v26 }
 0x2a1   :  { %v975_v31 = vadd.f32 1e-05, %v973_v35 }
 0x2a3   :  { %1047 = vrsqrt.f32 %v975_v31  ;;  %vm983_vm10 = vweird.f32 %v975_v31 }
 0x2a6   :  { %v972_v1 = vpop.xlane.xlu1 %971 }
 0x2a7   :  { %v974_v33 = vmul.f32 0.03125, %v972_v1 }
 0x2a9   :  { %v1048_v39 = vpop.eup %1047  ;;  %v976_v51 = vadd.f32 1e-05, %v974_v33 }
 0x2aa   :  { %v978_v52 = vmul.f32 %v1048_v39, %v975_v31  ;;  %vm984_vm9 = vweird.f32 %v1048_v39 }
 0x2ab   :  { %1049 = vrsqrt.f32 %v976_v51  ;;  %vm985_vm11 = vmor %vm983_vm10, %vm984_vm9  ;;  %vm993_vm13 = vweird.f32 %v976_v51 }
 0x2ac   :  { %v979_v9 = vmul.f32 %v1048_v39, %v978_v52 }
 0x2ae   :  { %v980_v57 = vmul.f32 0.5, %v979_v9 }
 0x2b0   :  { %v981_v7 = vsub.f32 1.5, %v980_v57 }
 0x2b1   :  { %v1050_v15 = vpop.eup %1049 }
 0x2b2   :  { %v982_v2 = vmul.f32 %v1048_v39, %v981_v7  ;;  %v988_v48 = vmul.f32 %v1050_v15, %v976_v51  ;;  %vm994_vm12 = vweird.f32 %v1050_v15 }
 0x2b3   :  { %vm995_vm14 = vmor %vm993_vm13, %vm994_vm12 }
 0x2b4   :  { %v986_v8 = vsel %vm985_vm11, %v1048_v39, %v982_v2  ;;  %v989_v21 = vmul.f32 %v1050_v15, %v988_v48 }
 0x2b5   :  { %v997_v36 = vmul.f32 %v986_v8, %v965_v54 }
 0x2b6   :  { %v990_v32 = vmul.f32 0.5, %v989_v21 }
 0x2b7   :  { %v1002_v27 = vmul.f32 %v1041_v30, %v997_v36 }
 0x2b8   :  { %v991_v56 = vsub.f32 1.5, %v990_v32 }
 0x2b9   :  { %v1007_v44 = vadd.f32 %v1042_v55, %v1002_v27 }
 0x2ba   :  { %v992_v25 = vmul.f32 %v1050_v15, %v991_v56 }
 0x2bb   :  { %1009 = vst [vmem:[#allocation9] sm:$0xff] %v1007_v44 }
 0x2bc   :  { %v996_v41 = vsel %vm995_vm14, %v1050_v15, %v992_v25 }
 0x2bd   :  { %v998_v50 = vmul.f32 %v996_v41, %v966_v24 }
 0x2bf   :  { %v1003_v4 = vmul.f32 %v1041_v30, %v998_v50 }
 0x2c1   :  { %v1008_v53 = vadd.f32 %v1042_v55, %v1003_v4 }
 0x2c3   :  { %1010 = vst [vmem:[#allocation9 + $0x8] sm:$0xff] %v1008_v53 }
 0x2c4   :  { %1023 = dma.vmem_to_hbm [thread:$0]  %s1016_s5, 256, %s1018_s24, [#allocation5], %s1154_s9, %s1154_s9, %s1155_s10  }
 0x2c5   :  { %1151 = dma.done.wait [#allocation5], 256  }
 0x2c6   :  { %1152 = vsyncadd [#allocation5], 4294967040 }
 0x2c7   :  { %1028 = vsyncpa [#allocation4], 1 }
 0x2c8   :  { %1029 = vsyncpa [#allocation7], 1 }
 0x2c9   :  { %1030 = vsyncpa [#allocation5], 1 }

</bundles_post_ra>
